<compile_context>
chip_gen: v5e
topology: v5e:2x2
jax: 0.10.0
libtpu: 0.0.40
codegen_flags: <defaults>
</compile_context>

<pallas_src>
import math

import jax
import jax.numpy as jnp
from jax import lax
from jax.experimental import pallas as pl
from jax.experimental.pallas import tpu as pltpu


_NEG_INF_FILL = -1e9  # matches torch masked_fill(-1e9); scores stay f32 so no overflow


def _pick_tile(s, target, multiple=128):
    """Largest tile <= target that divides s and is a multiple of `multiple`.
    Falls back to the full dim (always a legal block_shape)."""
    if s <= target:
        return s
    t = (target // multiple) * multiple
    while t >= multiple:
        if s % t == 0:
            return t
        t -= multiple
    return s


def _make_flash_kernel(scale, masked):
    """Online-softmax attention for one (b, h, q-tile), looped over kv tiles."""

    def kernel(*refs):
        if masked:
            q_ref, k_ref, v_ref, mask_ref, o_ref, m_sc, l_sc, acc_sc = refs
        else:
            q_ref, k_ref, v_ref, o_ref, m_sc, l_sc, acc_sc = refs
            mask_ref = None

        ki = pl.program_id(3)

        @pl.when(ki == 0)
        def _init():
            m_sc[...] = jnp.full(m_sc.shape, -jnp.inf, dtype=jnp.float32)
            l_sc[...] = jnp.zeros(l_sc.shape, dtype=jnp.float32)
            acc_sc[...] = jnp.zeros(acc_sc.shape, dtype=jnp.float32)

        # q/k/v arrive already in compute dtype (cast once in the wrapper -> bf16 DMAs).
        # Fold 1/sqrt(D) into the small (Tq, D) q tile instead of the (Tq, Tk) scores.
        q = q_ref[0, 0] * scale        # (Tq, D) compute dtype (weak-typed scalar mul)
        k = k_ref[0, 0]                # (Tk, D)
        v = v_ref[0, 0]                # (Tk, D)

        # scores = (q*scale) @ k^T — contract D of both operands so the MXU consumes K
        # in its native (Tk, D) layout (no XLU transpose); f32 accumulation.
        scores = lax.dot_general(
            q, k, (((1,), (1,)), ((), ())),
            preferred_element_type=jnp.float32)                  # (Tq, Tk) f32

        if masked:
            scores = jnp.where(mask_ref[0, 0] == 0,
                               jnp.float32(_NEG_INF_FILL), scores)

        m_prev = m_sc[...]                                       # (Tq, 1)
        m_new = jnp.maximum(m_prev, jnp.max(scores, axis=-1, keepdims=True))
        alpha = jnp.exp(m_prev - m_new)                          # (Tq, 1)  f32 (EUP)
        p = jnp.exp(scores - m_new)                              # (Tq, Tk) f32 (EUP)

        l_sc[...] = alpha * l_sc[...] + jnp.sum(p, axis=-1, keepdims=True)
        pv = lax.dot_general(
            p.astype(v.dtype), v, (((1,), (0,)), ((), ())),
            preferred_element_type=jnp.float32)                  # (Tq, D) f32
        acc_sc[...] = alpha * acc_sc[...] + pv
        m_sc[...] = m_new

        @pl.when(ki == pl.num_programs(3) - 1)
        def _finalize():
            inv_l = pl.reciprocal(l_sc[...], approx=True)        # EUP slot, ~free
            o_ref[0, 0] = (acc_sc[...] * inv_l).astype(o_ref.dtype)

    return kernel


def scaled_dot_product_attention(query, key, value, mask=None, *,
                                 block_q=None, block_k=None,
                                 compute_dtype=jnp.bfloat16):
    """Pallas TPU implementation of ScaledDotProductAttention.forward.

    query: [B, H, Sq, D], key/value: [B, H, Sk, D], mask: broadcastable to
    [B, H, Sq, Sk] (entries == 0 masked) or None. Returns [B, H, Sq, D] in
    query's dtype.

    compute_dtype=bf16 by default (MXU full rate); pass jnp.float32 for closer
    parity with the f32 PyTorch reference at reduced MXU throughput.
    """
    out_dtype = query.dtype
    B, H, Sq, D = query.shape
    Sk = key.shape[2]
    scale = 1.0 / math.sqrt(D)

    compute_dtype = jnp.dtype(compute_dtype)
    # Pre-cast in the wrapper: the kernel computes in compute_dtype anyway, so this
    # halves HBM traffic and K/V/Q VMEM tile footprint vs. DMAing f32 and casting
    # inside the kernel. Numerics are unchanged relative to the previous version.
    q_in = query if query.dtype == compute_dtype else query.astype(compute_dtype)
    k_in = key if key.dtype == compute_dtype else key.astype(compute_dtype)
    v_in = value if value.dtype == compute_dtype else value.astype(compute_dtype)

    # K/V are re-streamed once per q tile => K/V-stream intensity ~= Tq FLOP/byte.
    # Tq<=512 clears the MXU roofline on v5e/v6e/v7x; Tk<=1024 cuts per-step overhead
    # and rescale passes. Tiles fit well within the 32 MiB scoped VMEM default.
    tq = block_q if block_q is not None else _pick_tile(Sq, 512)
    tk = block_k if block_k is not None else _pick_tile(Sk, 1024)
    assert Sq % tq == 0 and Sk % tk == 0, "tile must divide sequence length"
    grid = (B, H, Sq // tq, Sk // tk)

    # NOTE: for D < 128 the output stores are lane-masked.
    # TODO(synk): for D < 128, fold multiple heads into one block (reshape to
    # (tq, Hf*D) around the PV matmul / store) so the output is lane-dense.
    q_spec = pl.BlockSpec((1, 1, tq, D), lambda b, h, qi, ki: (b, h, qi, 0))
    k_spec = pl.BlockSpec((1, 1, tk, D), lambda b, h, qi, ki: (b, h, ki, 0))
    v_spec = pl.BlockSpec((1, 1, tk, D), lambda b, h, qi, ki: (b, h, ki, 0))
    out_spec = pl.BlockSpec((1, 1, tq, D), lambda b, h, qi, ki: (b, h, qi, 0))
    out_shape = jax.ShapeDtypeStruct((B, H, Sq, D), out_dtype)

    scratch_shapes = [
        pltpu.VMEM((tq, 1), jnp.float32),   # running row max  m
        pltpu.VMEM((tq, 1), jnp.float32),   # running denom    l
        pltpu.VMEM((tq, D), jnp.float32),   # running numerator acc
    ]

    in_specs = [q_spec, k_spec, v_spec]
    args = [q_in, k_in, v_in]
    mask_bytes = 0

    if mask is not None:
        # Keep the mask in its (possibly broadcast) B/H shape — no B*H*Sq*Sk
        # materialization; the index_map clamps the b/h block coordinates instead.
        m = mask
        while m.ndim < 4:
            m = m[None]
        m = (m != 0).astype(jnp.int8)         # robust to float masks; 4x smaller than i32
        mb, mh, msq, msk = m.shape
        if msq != Sq or msk != Sk:            # only expand the seq dims if broadcast there
            m = jnp.broadcast_to(m, (mb, mh, Sq, Sk))
        b_stride = 1 if mb > 1 else 0
        h_stride = 1 if mh > 1 else 0
        mask_spec = pl.BlockSpec(
            (1, 1, tq, tk),
            lambda b, h, qi, ki: (b * b_stride, h * h_stride, qi, ki))
        in_specs.append(mask_spec)
        args.append(m)
        mask_bytes = B * H * Sq * Sk          # int8 tile fetched per (b,h,qi,ki)

    # TODO(synk): for structurally-known masks (e.g. causal), generate the mask
    # in-kernel from program_id + broadcasted_iota and skip fully-masked kv tiles
    # via scalar prefetch; not done here since the module accepts arbitrary masks.

    # Realistic traffic estimate: K/V re-streamed once per q tile.
    in_item = compute_dtype.itemsize
    n_q_tiles = Sq // tq
    bytes_accessed = (
        B * H * Sq * D * in_item                              # Q
        + 2 * B * H * Sk * D * in_item * n_q_tiles            # K, V re-streamed
        + B * H * Sq * D * jnp.dtype(out_dtype).itemsize      # output
        + mask_bytes)
    cost = pl.CostEstimate(
        flops=4 * B * H * Sq * Sk * D,
        transcendentals=B * H * Sq * Sk,
        bytes_accessed=int(bytes_accessed),
    )

    cparams = pltpu.CompilerParams(
        dimension_semantics=("parallel", "parallel", "parallel", "arbitrary"),
    )

    kernel = _make_flash_kernel(scale, mask is not None)

    return pl.pallas_call(
        kernel,
        out_shape=out_shape,
        grid=grid,
        in_specs=in_specs,
        out_specs=out_spec,
        scratch_shapes=scratch_shapes,
        compiler_params=cparams,
        cost_estimate=cost,
    )(*args)


def _reference(query, key, value, mask=None):
    d_k = query.shape[-1]
    scores = jnp.einsum("bhqd,bhkd->bhqk", query, key) / math.sqrt(d_k)
    if mask is not None:
        scores = jnp.where(mask == 0, -1e9, scores)
    attn = jax.nn.softmax(scores, axis=-1)
    return jnp.einsum("bhqk,bhkd->bhqd", attn, value)


if __name__ == "__main__":
    key0 = jax.random.PRNGKey(0)
    kq, kk, kv = jax.random.split(key0, 3)

    # Small shapes consistent with the module: B=2, H=4, S=8, D=32.
    B, H, S, D = 2, 4, 8, 32
    q = jax.random.normal(kq, (B, H, S, D), dtype=jnp.float32)
    k = jax.random.normal(kk, (B, H, S, D), dtype=jnp.float32)
    v = jax.random.normal(kv, (B, H, S, D), dtype=jnp.float32)

    # mask=None path (module default).
    out = jax.block_until_ready(scaled_dot_product_attention(q, k, v))
    ref = _reference(q, k, v)
    assert jnp.allclose(out, ref, atol=3e-2, rtol=3e-2), "unmasked mismatch"

    # masked path (full [B, H, S, S] mask).
    causal = jnp.tril(jnp.ones((S, S), dtype=jnp.int32))
    mask = jnp.broadcast_to(causal, (B, H, S, S))
    out_m = jax.block_until_ready(scaled_dot_product_attention(q, k, v, mask))
    ref_m = _reference(q, k, v, mask)
    assert jnp.allclose(out_m, ref_m, atol=3e-2, rtol=3e-2), "masked mismatch"

    # Tiled multi-kv-step online-softmax path (2 q-tiles x 2 kv-tiles) with a
    # broadcast [1, 1, S, S] mask — exercises the non-materialized b/h clamping.
    B2, H2, S2, D2 = 1, 2, 256, 128
    kq2, kk2, kv2 = jax.random.split(jax.random.PRNGKey(1), 3)
    q2 = jax.random.normal(kq2, (B2, H2, S2, D2), dtype=jnp.float32)
    k2 = jax.random.normal(kk2, (B2, H2, S2, D2), dtype=jnp.float32)
    v2 = jax.random.normal(kv2, (B2, H2, S2, D2), dtype=jnp.float32)
    mask2 = jnp.tril(jnp.ones((S2, S2), dtype=jnp.int32))[None, None]  # [1,1,S,S]
    out2 = jax.block_until_ready(
        scaled_dot_product_attention(q2, k2, v2, mask2, block_q=128, block_k=128))
    ref2 = _reference(q2, k2, v2, jnp.broadcast_to(mask2, (B2, H2, S2, S2)))
    assert jnp.allclose(out2, ref2, atol=3e-2, rtol=3e-2), "tiled masked mismatch"

    print("KERNEL_OK")
</pallas_src>

<mosaic_0001>
module attributes {stable_mosaic.version = 11 : i64} {
  func.func @kernel(%arg0: i32, %arg1: i32, %arg2: i32, %arg3: i32, %arg4: memref<1x1x8x32xbf16, #tpu.memory_space<vmem>>, %arg5: memref<1x1x8x32xbf16, #tpu.memory_space<vmem>>, %arg6: memref<1x1x8x32xbf16, #tpu.memory_space<vmem>>, %arg7: memref<1x1x8x32xf32, #tpu.memory_space<vmem>>, %arg8: memref<8x1xf32, #tpu.memory_space<vmem>>, %arg9: memref<8x1xf32, #tpu.memory_space<vmem>>, %arg10: memref<8x32xf32, #tpu.memory_space<vmem>>) attributes {dimension_semantics = [#tpu.dimension_semantics<parallel>, #tpu.dimension_semantics<parallel>, #tpu.dimension_semantics<parallel>, #tpu.dimension_semantics<arbitrary>], iteration_bounds = array<i64: 2, 4, 1, 1>, scalar_prefetch = 0 : i64, scratch_operands = 3 : i64, tpu.core_type = #tpu.core_type<tc>, window_params = [{transform_indices = @transform_0, window_bounds = array<i64: 1, 1, 8, 32>}, {transform_indices = @transform_1, window_bounds = array<i64: 1, 1, 8, 32>}, {transform_indices = @transform_2, window_bounds = array<i64: 1, 1, 8, 32>}, {transform_indices = @transform_3, window_bounds = array<i64: 1, 1, 8, 32>}]} {
    %c0_i32 = arith.constant 0 : i32
    %0 = arith.cmpi eq, %arg3, %c0_i32 : i32
    %1 = arith.extui %0 : i1 to i32
    %c0_i32_0 = arith.constant 0 : i32
    %2 = arith.cmpi ne, %1, %c0_i32_0 : i32
    scf.if %2 {
      %cst_30 = arith.constant 0xFF800000 : f32
      %38 = vector.broadcast %cst_30 : f32 to vector<8x1xf32>
      %c0_31 = arith.constant 0 : index
      %c0_32 = arith.constant 0 : index
      %39 = vector.load %arg8[%c0_31, %c0_32] : memref<8x1xf32, #tpu.memory_space<vmem>>, vector<8x1xf32>
      tpu.vector_store %arg8[%c0_31, %c0_32], %38 {strides = array<i32>} : memref<8x1xf32, #tpu.memory_space<vmem>>, vector<8x1xf32>,
      %cst_33 = arith.constant 0.000000e+00 : f32
      %40 = vector.broadcast %cst_33 : f32 to vector<8x1xf32>
      %c0_34 = arith.constant 0 : index
      %c0_35 = arith.constant 0 : index
      %41 = vector.load %arg9[%c0_34, %c0_35] : memref<8x1xf32, #tpu.memory_space<vmem>>, vector<8x1xf32>
      tpu.vector_store %arg9[%c0_34, %c0_35], %40 {strides = array<i32>} : memref<8x1xf32, #tpu.memory_space<vmem>>, vector<8x1xf32>,
      %cst_36 = arith.constant 0.000000e+00 : f32
      %42 = vector.broadcast %cst_36 : f32 to vector<8x32xf32>
      %c0_37 = arith.constant 0 : index
      %c0_38 = arith.constant 0 : index
      %43 = vector.load %arg10[%c0_37, %c0_38] : memref<8x32xf32, #tpu.memory_space<vmem>>, vector<8x32xf32>
      tpu.vector_store %arg10[%c0_37, %c0_38], %42 {strides = array<i32>} : memref<8x32xf32, #tpu.memory_space<vmem>>, vector<8x32xf32>,
    } else {
    }
    %c0 = arith.constant 0 : index
    %c0_1 = arith.constant 0 : index
    %c0_2 = arith.constant 0 : index
    %c0_3 = arith.constant 0 : index
    %3 = vector.load %arg4[%c0, %c0_1, %c0_2, %c0_3] : memref<1x1x8x32xbf16, #tpu.memory_space<vmem>>, vector<1x1x8x32xbf16>
    %4 = vector.shape_cast %3 : vector<1x1x8x32xbf16> to vector<8x32xbf16>
    %cst = arith.constant 1.767580e-01 : bf16
    %5 = vector.broadcast %cst : bf16 to vector<8x32xbf16>
    %6 = arith.mulf %4, %5 : vector<8x32xbf16>
    %c0_4 = arith.constant 0 : index
    %c0_5 = arith.constant 0 : index
    %c0_6 = arith.constant 0 : index
    %c0_7 = arith.constant 0 : index
    %7 = vector.load %arg5[%c0_4, %c0_5, %c0_6, %c0_7] : memref<1x1x8x32xbf16, #tpu.memory_space<vmem>>, vector<1x1x8x32xbf16>
    %8 = vector.shape_cast %7 : vector<1x1x8x32xbf16> to vector<8x32xbf16>
    %c0_8 = arith.constant 0 : index
    %c0_9 = arith.constant 0 : index
    %c0_10 = arith.constant 0 : index
    %c0_11 = arith.constant 0 : index
    %9 = vector.load %arg6[%c0_8, %c0_9, %c0_10, %c0_11] : memref<1x1x8x32xbf16, #tpu.memory_space<vmem>>, vector<1x1x8x32xbf16>
    %10 = vector.shape_cast %9 : vector<1x1x8x32xbf16> to vector<8x32xbf16>
    %cst_12 = arith.constant dense<0.000000e+00> : vector<8x8xf32>
    %11 = tpu.matmul %6, %8, %cst_12 {dimension_numbers = #tpu.dot_dimension_numbers<[1], [1], [0], [0], [0, 0, 1, 0], [], []>} : vector<8x32xbf16>, vector<8x32xbf16>, vector<8x8xf32> -> vector<8x8xf32>
    %c0_13 = arith.constant 0 : index
    %c0_14 = arith.constant 0 : index
    %12 = vector.load %arg8[%c0_13, %c0_14] : memref<8x1xf32, #tpu.memory_space<vmem>>, vector<8x1xf32>
    %cst_15 = arith.constant dense<0xFF800000> : vector<8xf32>
    %13 = vector.multi_reduction <maximumf>, %11, %cst_15 [1] : vector<8x8xf32> to vector<8xf32>
    %14 = vector.shape_cast %13 : vector<8xf32> to vector<8x1xf32>
    %15 = arith.maximumf %12, %14 : vector<8x1xf32>
    %16 = arith.subf %12, %15 : vector<8x1xf32>
    %17 = math.exp %16 : vector<8x1xf32>
    %18 = vector.broadcast %15 : vector<8x1xf32> to vector<8x8xf32>
    %19 = arith.subf %11, %18 : vector<8x8xf32>
    %20 = math.exp %19 : vector<8x8xf32>
    %c0_16 = arith.constant 0 : index
    %c0_17 = arith.constant 0 : index
    %21 = vector.load %arg9[%c0_16, %c0_17] : memref<8x1xf32, #tpu.memory_space<vmem>>, vector<8x1xf32>
    %22 = arith.mulf %17, %21 : vector<8x1xf32>
    %cst_18 = arith.constant dense<0.000000e+00> : vector<8xf32>
    %23 = vector.multi_reduction <add>, %20, %cst_18 [1] : vector<8x8xf32> to vector<8xf32>
    %24 = vector.shape_cast %23 : vector<8xf32> to vector<8x1xf32>
    %25 = arith.addf %22, %24 : vector<8x1xf32>
    %c0_19 = arith.constant 0 : index
    %c0_20 = arith.constant 0 : index
    %26 = vector.load %arg9[%c0_19, %c0_20] : memref<8x1xf32, #tpu.memory_space<vmem>>, vector<8x1xf32>
    tpu.vector_store %arg9[%c0_19, %c0_20], %25 {strides = array<i32>} : memref<8x1xf32, #tpu.memory_space<vmem>>, vector<8x1xf32>,
    %27 = arith.truncf %20 : vector<8x8xf32> to vector<8x8xbf16>
    %cst_21 = arith.constant dense<0.000000e+00> : vector<8x32xf32>
    %28 = tpu.matmul %27, %10, %cst_21 {dimension_numbers = #tpu.dot_dimension_numbers<[1], [0], [0], [1], [0, 0, 1, 1], [], []>} : vector<8x8xbf16>, vector<8x32xbf16>, vector<8x32xf32> -> vector<8x32xf32>
    %c0_22 = arith.constant 0 : index
    %c0_23 = arith.constant 0 : index
    %29 = vector.load %arg10[%c0_22, %c0_23] : memref<8x32xf32, #tpu.memory_space<vmem>>, vector<8x32xf32>
    %30 = vector.broadcast %17 : vector<8x1xf32> to vector<8x32xf32>
    %31 = arith.mulf %30, %29 : vector<8x32xf32>
    %32 = arith.addf %31, %28 : vector<8x32xf32>
    %c0_24 = arith.constant 0 : index
    %c0_25 = arith.constant 0 : index
    %33 = vector.load %arg10[%c0_24, %c0_25] : memref<8x32xf32, #tpu.memory_space<vmem>>, vector<8x32xf32>
    tpu.vector_store %arg10[%c0_24, %c0_25], %32 {strides = array<i32>} : memref<8x32xf32, #tpu.memory_space<vmem>>, vector<8x32xf32>,
    %c0_26 = arith.constant 0 : index
    %c0_27 = arith.constant 0 : index
    %34 = vector.load %arg8[%c0_26, %c0_27] : memref<8x1xf32, #tpu.memory_space<vmem>>, vector<8x1xf32>
    tpu.vector_store %arg8[%c0_26, %c0_27], %15 {strides = array<i32>} : memref<8x1xf32, #tpu.memory_space<vmem>>, vector<8x1xf32>,
    %c0_i32_28 = arith.constant 0 : i32
    %35 = arith.cmpi eq, %arg3, %c0_i32_28 : i32
    %36 = arith.extui %35 : i1 to i32
    %c0_i32_29 = arith.constant 0 : i32
    %37 = arith.cmpi ne, %36, %c0_i32_29 : i32
    scf.if %37 {
      %c0_30 = arith.constant 0 : index
      %c0_31 = arith.constant 0 : index
      %38 = vector.load %arg9[%c0_30, %c0_31] : memref<8x1xf32, #tpu.memory_space<vmem>>, vector<8x1xf32>
      %39 = tpu.reciprocal %38 {approx = true} : vector<8x1xf32> -> vector<8x1xf32>
      %c0_32 = arith.constant 0 : index
      %c0_33 = arith.constant 0 : index
      %40 = vector.load %arg10[%c0_32, %c0_33] : memref<8x32xf32, #tpu.memory_space<vmem>>, vector<8x32xf32>
      %41 = vector.broadcast %39 : vector<8x1xf32> to vector<8x32xf32>
      %42 = arith.mulf %40, %41 : vector<8x32xf32>
      %c0_34 = arith.constant 0 : index
      %c0_35 = arith.constant 0 : index
      %c0_36 = arith.constant 0 : index
      %c0_37 = arith.constant 0 : index
      %43 = vector.load %arg7[%c0_34, %c0_35, %c0_36, %c0_37] : memref<1x1x8x32xf32, #tpu.memory_space<vmem>>, vector<1x1x8x32xf32>
      %44 = vector.shape_cast %43 : vector<1x1x8x32xf32> to vector<8x32xf32>
      %45 = vector.shape_cast %42 : vector<8x32xf32> to vector<1x1x8x32xf32>
      tpu.vector_store %arg7[%c0_34, %c0_35, %c0_36, %c0_37], %45 {strides = array<i32>} : memref<1x1x8x32xf32, #tpu.memory_space<vmem>>, vector<1x1x8x32xf32>,
    } else {
    }
    return
  }
  func.func @transform_0(%arg0: i32, %arg1: i32, %arg2: i32, %arg3: i32) -> (i32, i32, i32, i32) {
    %c0_i32 = arith.constant 0 : i32
    %c0_i32_0 = arith.constant 0 : i32
    return %arg0, %arg1, %arg2, %c0_i32 : i32, i32, i32, i32
  }
  func.func @transform_1(%arg0: i32, %arg1: i32, %arg2: i32, %arg3: i32) -> (i32, i32, i32, i32) {
    %c0_i32 = arith.constant 0 : i32
    %c0_i32_0 = arith.constant 0 : i32
    return %arg0, %arg1, %arg3, %c0_i32 : i32, i32, i32, i32
  }
  func.func @transform_2(%arg0: i32, %arg1: i32, %arg2: i32, %arg3: i32) -> (i32, i32, i32, i32) {
    %c0_i32 = arith.constant 0 : i32
    %c0_i32_0 = arith.constant 0 : i32
    return %arg0, %arg1, %arg3, %c0_i32 : i32, i32, i32, i32
  }
  func.func @transform_3(%arg0: i32, %arg1: i32, %arg2: i32, %arg3: i32) -> (i32, i32, i32, i32) {
    %c0_i32 = arith.constant 0 : i32
    %c0_i32_0 = arith.constant 0 : i32
    return %arg0, %arg1, %arg2, %c0_i32 : i32, i32, i32, i32
  }
}

</mosaic_0001>

<bundles_post_ra>
// kernel: tpu_custom_call.1
= control target key start
LH: loop header
LB: loop body
LE: loop exit
PB: predicated region body
PF: predicated region fallthrough
CT: control target
= control target key end

     0   :  { %s1114_s0 = inlined_call_operand.hbm [shape: bf16[2,4,8,32], index: 0, kind: input, shape index: {}]   ;;  %s1115_s1 = inlined_call_operand.hbm [shape: bf16[2,4,8,32], index: 1, kind: input, shape index: {}]   ;;  %s1116_s2 = inlined_call_operand.hbm [shape: bf16[2,4,8,32], index: 2, kind: input, shape index: {}]   ;;  %s1117_s3 = inlined_call_operand.hbm [shape: f32[2,4,8,32], index: 3, kind: output, shape index: {}]  }
   0x1   :  { %1123 = sst [smem:[#allocation21_spill]] %s1115_s1 }
   0x2   :  { %8 = vsyncpa [#allocation6], 0 }
   0x3   :  { %10 = vsyncpa [#allocation6 + $0x1], 0 }
   0x4   :  { %11 = vsyncpa [#allocation9], 0 }
   0x5   :  { %13 = vsyncpa [#allocation9 + $0x1], 0 }
   0x6   :  { %14 = vsyncpa [#allocation7], 0 }
   0x7   :  { %16 = vsyncpa [#allocation7 + $0x1], 0  ;;  %s922_s12 = smov 0   ;;  %s924_s13 = smov 0  }
   0x8   :  { %s926_s14 = smov 0   ;;  %s928_s15 = smov 0  }
   0x9   :  { %s930_s16 = smov 0   ;;  %s932_s17 = smov 0  }
   0xa   :  { %s934_s18 = smov 0   ;;  %s936_s19 = smov 0  }
   0xb LB: > { %1124 = sst [smem:[#allocation15_spill]] %s877_s14  ;;  %s963_s20 = sadd.s32 4294967295, %s897_s19   ;;  %s897_s19 = sphi %s936_s19, %s22_s19   ;;  %s893_s18 = sphi %s934_s18, %s1142_s18   ;;  %s889_s17 = sphi %s932_s17, %s1145_s17   ;;  %s885_s16 = sphi %s930_s16, %s1140_s16   ;;  %s881_s15 = sphi %s928_s15, %s1139_s15   ;;  %s877_s14 = sphi %s926_s14, %s1138_s14   ;;  %s873_s13 = sphi %s924_s13, %s1144_s13   ;;  %s869_s12 = sphi %s922_s12, %s1143_s12  }
   0xc   : > { %1125 = sst [smem:[#allocation16_spill]] %s889_s17  ;;  %s581_s21 = sadd.s32 4294967294, %s897_s19  }
   0xd   : > { %1126 = sst [smem:[#allocation17_spill]] %s893_s18  ;;  %s44_s22 = sadd.s32 1, %s889_s17 }
   0xe   : > { %s48_s23 = sadd.s32 1, %s893_s18  ;;  %p46_p0 = scmp.ge.s32.totalorder %s44_s22, 4 }
   0xf   : > { %s59_s24 = sadd.s32 1, %s877_s14  ;;  %p66_p1 = scmp.ne.s32.totalorder %s877_s14, %s873_s13 }
  0x10   : > { %p67_p2 = scmp.eq.s32.totalorder %s897_s19, 0  ;;  %s1147_s22 = smov (%p46_p0, %s44_s22), 0 }
  0x11   : > { %1127 = sst [smem:[#allocation18_spill]] %s1147_s22  ;;  %s1149_s23 = smov (!%p46_p0, %s48_s23), %s893_s18 }
  0x12   : > { %s53_s25 = ssub.s32 %s889_s17, %s1147_s22  ;;  %p977_p3 = por %p67_p2, %p66_p1 }
  0x13   : > { %p50_p4 = scmp.ge.s32.totalorder %s1149_s23, 2  ;;  %p72_p5 = scmp.ne.s32.totalorder %s873_s13, %s869_s12 }
  0x14   : > { %p73_p6 = scmp.eq.s32.totalorder %s963_s20, 0  ;;  %p160_p7 = scmp.eq.s32.totalorder %s963_s20, 7 }
  0x15   : > { %s1151_s23 = smov (%p50_p4, %s1149_s23), 0  ;;  %p166_p10 = scmp.eq.s32.totalorder %s581_s21, 7 }
  0x16   : > { %1129 = sst [smem:[#allocation19_spill]] %s1151_s23  ;;  %p987_p8 = por %p73_p6, %p72_p5 }
  0x17   : > { %p991_p9 = por %p160_p7, %p66_p1  ;;  %s52_s29 = ssub.s32 %s893_s18, %s1151_s23 }
  0x18   : > { %s54_s30 = sor.u32 %s53_s25, %s52_s29  ;;  %p997_p12 = por %p166_p10, %p72_p5 }
  0x19   : > { %p57_p11 = scmp.eq.s32.totalorder %s54_s30, 0  ;;  %p627_p13 = scmp.lt.s32.totalorder %s897_s19, 8 }
  0x1a   : > { %s186_s5 = sand.u32 1, %s877_s14   ;;  %s585_s8 = sshll.u32 %s893_s18, 2 }
  0x1b   : > { %s1004_s6 = scalar_select %p57_p11, %s877_s14, %s59_s24  }
  0x1c   : > { %s584_s7 = sshll.u32 %s186_s5, 2  ;;  %s195_s9 = sadd.s32 %s889_s17, %s585_s8 }
  0x1d   : > { %1133 = sst [smem:[#allocation20_spill]] %s1004_s6  ;;  %p1010_p0 = pnand %p627_p13, %p977_p3 }
  0x1e   : > { %s586_s11 = sshll.u32 %s195_s9, 2  ;;  %s208_s21 = sand.u32 1, %s897_s19  }
  0x1f   : > { %s1135_s1 = sld [smem:[#allocation21_spill]]  ;;  %s212_s22 = scalar_lea.vmem [#allocation8], %s584_s7 }
  0x20   : > { %s223_s24 = sshll.u32 %s212_s22, 4  ;;  %s209_s18 = scalar_lea.sflag [#allocation9], %s208_s21  ;;  %s224_s24 = int_to_ptr.vmem [resolvable:$true] %s223_s24 }
  0x21   : > { %p593_p1 = scmp.ge.s32.totalorder %s897_s19, 1  ;;  %p250_p2 = scmp.lt.s32.totalorder %s897_s19, 9 }
  0x22   : > { %s197_s25 = scalar_lea.hbm %s1114_s0, %s586_s11  ;;  %s187_s22 = scalar_lea.sflag [#allocation6], %s186_s5 }
  0x23   : > { %p1022_p3 = pnand %p593_p1, %p250_p2  ;;  %s199_s29 = sshll.u32 %s197_s25, 4  ;;  %s200_s29 = int_to_ptr.hbm [resolvable:$true] %s199_s29 }
  0x24   : > { %s234_s6 = scalar_lea.vmem [#allocation10], %s584_s7  ;;  %s1039_s8 = sand.u32 (!%p1022_p3), 1, %s873_s13  }
  0x25   : > { %s219_s30 = scalar_lea.hbm %s1135_s1, %s586_s11  ;;  %s245_s14 = sshll.u32 %s234_s6, 4  ;;  %s246_s14 = int_to_ptr.vmem [resolvable:$true] %s245_s14 }
  0x26   : > { %s221_s23 = sshll.u32 %s219_s30, 4  ;;  %s190_s30 = scalar_lea.vmem [#allocation5], %s584_s7  ;;  %s222_s23 = int_to_ptr.hbm [resolvable:$true] %s221_s23 }
  0x27   : > { %619 = dma.hbm_to_vmem [thread:$0]  (!%p1010_p0), %s222_s23, 64, %s224_s24, %s209_s18  }
  0x28   : > { %s201_s1 = sshll.u32 %s190_s30, 4  ;;  %s241_s24 = scalar_lea.hbm %s1116_s2, %s586_s11  ;;  %s202_s1 = int_to_ptr.vmem [resolvable:$true] %s201_s1 }
  0x29   : > { %616 = dma.hbm_to_vmem [thread:$0]  (!%p1010_p0), %s200_s29, 64, %s202_s1, %s187_s22  }
  0x2a   : > { %s243_s17 = sshll.u32 %s241_s24, 4  ;;  %254 = sbr.rel (%p1022_p3) target bundleno = 661 (0x295), region = 32  ;;  %s244_s17 = int_to_ptr.hbm [resolvable:$true] %s243_s17 }
  0x2b   : > { %622 = dma.hbm_to_vmem [thread:$0]  (!%p1010_p0), %s244_s17, 64, %s246_s14, %s209_s18  }
  0x2c   : > { %s1042_s1 = sshll.u32 (!%p1022_p3), %s1039_s8, 2  ;;  %s257_s5 = scalar_lea.sflag (!%p1022_p3), [#allocation6], %s1039_s8 }
  0x2d   : > { %s260_s11 = scalar_lea.vmem (!%p1022_p3), [#allocation5], %s1042_s1 }
  0x2f   : > { %856 = dma.done.wait (%p987_p8), %s257_s5, 64  }
  0x30   : > { %858 = vsyncadd (%p987_p8), %s257_s5, 4294967232  ;;  %s266_s14 = sand.u32 1, %s963_s20   ;;  %s270_s18 = scalar_lea.vmem [#allocation8], %s1042_s1 }
  0x31   : > { %s267_s17 = scalar_lea.sflag [#allocation9], %s266_s14 }
  0x32   : > { %860 = dma.done.wait (%p987_p8), %s267_s17, 128  }
  0x33   : > { %862 = vsyncadd (%p987_p8), %s267_s17, 4294967168  ;;  %vm322_vm0 = vcmask 261120   ;;  %v899_v0 = vmov 0.0   ;;  %v328_v1 = vld [vmem:[%s270_s18] sm:$0xf]  ;;  %vm319_vm1 = vcmask 7168  }
  0x34   : > { %323 = vst.msk [vmem:[#allocation4] sm:$0xff] %vm322_vm0, %v899_v0  ;;  %v324_v2 = vld [vmem:[%s260_s11] sm:$0xf]  ;;  %v335_v3 = vsel %vm322_vm0, %v328_v1, 0  ;;  %v900_v7 = vmov -inf   ;;  %vm351_vm2 = vcmask 64512  }
  0x35   : > { %v325_v4 = vunpack.c.l.bf16 %v324_v2  ;;  %344 = vmatpush.bf16.xpose.msra.mxu0 %v335_v3  ;;  %320 = vst.msk [vmem:[#allocation2] sm:$0xff] %vm319_vm1, %v900_v7  ;;  %v901_v11 = vmov 0   ;;  %s280_s20 = scalar_lea.vmem [#allocation10], %s1042_s1  ;;  %vm379_vm3 = vcmask 1043456   ;;  %s601_s27 = sshll.u32 %s885_s16, 2 }
  0x36   : > { %321 = vst.msk [vmem:[#allocation3] sm:$0xff] %vm319_vm1, %v899_v0  ;;  %696 = vset.pattern.permute.xlu0 %v901_v11  ;;  %697 = vset.pattern.permute.xlu1 %v901_v11  ;;  %v329_v16 = vld [vmem:[%s280_s20] sm:$0xf]  ;;  %s431_s6 = sadd.s32 %s881_s15, %s601_s27  ;;  %s597_s7 = sshll.u32 %s1039_s8, 3 }
  0x37   : > { %v326_v5 = vmul.f32 0.17675781, %v325_v4  ;;  %698 = vset.pattern.permute.xlu2 %v901_v11  ;;  %v381_v17 = vsel %vm379_vm3, %v329_v16, 0  ;;  %s602_s10 = sshll.u32 %s431_s6, 3  ;;  %s313_s29 = scalar_lea.vmem [#allocation11], %s597_s7 }
  0x38   : > { %390 = vmatpush.bf16.msra.mxu1 %v381_v17  ;;  %s433_s25 = scalar_lea.hbm %s1117_s3, %s602_s10  ;;  %s435_s30 = sshll.u32 %s313_s29, 4  ;;  %s436_s30 = int_to_ptr.vmem [resolvable:$true] %s435_s30 }
  0x39   : > { %v327_v6 = vpack.c.bf16 %v326_v5, %v326_v5  ;;  %s437_s22 = sshll.u32 %s433_s25, 4  ;;  %s420_s23 = scalar_lea.sflag [#allocation7], %s1039_s8  ;;  %s438_s22 = int_to_ptr.hbm [resolvable:$true] %s437_s22 }
  0x3a   : > { %s809_s16 = sshra.s32 %s438_s22, 4  ;;  %s815_s1 = scalar_lea.hbm %s1117_s3, 64  ;;  %s810_s16 = int_to_ptr.hbm [resolvable:$true] %s809_s16 }
  0x3b   : > { %v396_v34 = vld [vmem:[#allocation4] sm:$0xff]  ;;  %s811_s15 = scalar_lea.hbm %s810_s16, 8  ;;  %p816_p7 = scmp.lt.s32.totalorder %s810_s16, %s1117_s3 }
  0x3c   : > { %598 = vmatmul.msk.bf16.vlgmr.msra.gmra.mxu0 %vm322_vm0, %v327_v6  ;;  %v350_v12 = vld [vmem:[#allocation2] sm:$0xff]  ;;  %p812_p4 = scmp.ne.s32.totalorder %s810_s16, %s811_s15  ;;  %p817_p8 = scmp.lt.s32.totalorder %s815_s1, %s811_s15 }
  0x3d   : > { %v367_v26 = vld [vmem:[#allocation3] sm:$0xff] }
  0x3e   : > { %p813_p5 = pnand %p812_p4, %p991_p9  ;;  %p818_p10 = por %p817_p8, %p816_p7 }
  0x40   : > { %p814_p6 = pneg %p813_p5 }
  0x42   : > { %p819_p11 = pnand %p818_p10, %p814_p6 }
  0xb9   : > { %v346_v8 = vpop.f32.mrf.mxu0 }
  0xba   : > { %v352_v9 = vsel %vm351_vm2, %v346_v8, -inf }
  0xbb   : > { %353 = vmax.xlane.f32.xlu0 %v352_v9 }
  0xc1   : > { %v348_v10 = vpop.f32.mrf.mxu0 }
 0x12e   : > { %v354_v13 = vpop.xlane.xlu0 %353 }
 0x12f   : > { %v355_v14 = vmax.f32 %v350_v12, %v354_v13 }
 0x131   : > { %v356_v15 = vsub.f32 %v350_v12, %v355_v14  ;;  %405 = vst.msk [vmem:[#allocation2] sm:$0xff] %vm319_vm1, %v355_v14  ;;  %361 = vperm.xlu0 %696, %v355_v14  }
 0x133   : > { %v357_v24 = vmul.f32 1.442695, %v356_v15 }
 0x1a3   : > { %v362_v18 = vpop.permute.xlu0 %361 }
 0x1a4   : > { %v364_v19 = vsub.f32 %v346_v8, %v362_v18 }
 0x1a6   : > { %v365_v20 = vmul.f32 1.442695, %v364_v19 }
 0x1a8   : > { %699 = vpow2.f32 %v365_v20 }
 0x1a9   : > { %701 = vpow2.f32 %v357_v24 }
 0x1ae   : > { %v700_v21 = vpop.eup %699 }
 0x1af   : > { %v369_v22 = vsel %vm351_vm2, %v700_v21, 0.0  ;;  %v375_v23 = vpack.c.bf16 %v700_v21, %v700_v21  ;;  %v702_v25 = vpop.eup %701 }
 0x1b0   : > { %370 = vadd.xlane.f32.xlu1 %v369_v22  ;;  %v368_v27 = vmul.f32 %v702_v25, %v367_v26 }
 0x1b1   : > { %599 = vmatmul.msk.bf16.vlgmr.msra.gmra.mxu1 %vm351_vm2, %v375_v23 }
 0x1c9   : > { %399 = vperm.xlu1 %697, %v702_v25  }
 0x223   : > { %v371_v28 = vpop.xlane.xlu1 %370 }
 0x224   : > { %v372_v29 = vadd.f32 %v371_v28, %v368_v27 }
 0x226   : > { %374 = vst.msk [vmem:[#allocation3] sm:$0xff] %vm319_vm1, %v372_v29 }
 0x22d   : > { %v409_v30 = vld [vmem:[#allocation3] sm:$0xff] }
 0x22e   : > { %v392_v31 = vpop.f32.mrf.mxu1  ;;  %703 = vrcp.f32 %v409_v30 }
 0x234   : > { %v704_v32 = vpop.eup %703 }
 0x235   : > { %414 = vperm.xlu2 %698, %v704_v32  }
 0x236   : > { %v394_v33 = vpop.f32.mrf.mxu1 }
 0x23b   : > { %v400_v35 = vpop.permute.xlu1 %399 }
 0x23c   : > { %v402_v36 = vmul.f32 %v400_v35, %v396_v34 }
 0x23e   : > { %v403_v37 = vadd.f32 %v402_v36, %v392_v31 }
 0x240   : > { %404 = vst.msk [vmem:[#allocation4] sm:$0xff] %vm322_vm0, %v403_v37 }
 0x247   : > { %v411_v38 = vld [vmem:[#allocation4] sm:$0xff] }
 0x28f   : > { %v415_v39 = vpop.permute.xlu2 %414 }
 0x290   : > { %v417_v40 = vmul.f32 %v415_v39, %v411_v38 }
 0x292   : > { %418 = vst.msk [vmem:[%s313_s29] sm:$0xff] %vm322_vm0, %v417_v40 }
 0x293   : > { %822 = shalt.err (!%p819_p11)
}
 0x294   : > { %611 = dma.vmem_to_hbm [thread:$0]  (%p991_p9), %s436_s30, 128, %s438_s22, %s420_s23  }
 0x295 PF: > { %p628_p13 = scmp.ge.s32.totalorder %s897_s19, 2  ;;  %s449_s8 = sand.u32 1, %s869_s12  }
 0x296   : > { %s450_s14 = scalar_lea.sflag [#allocation7], %s449_s8 }
 0x297   : > { %p624_p0 = pnand %p628_p13, %p997_p12 }
 0x299   : > { %p625_p1 = pneg %p624_p0 }
 0x29b   : > { %864 = dma.done.wait (%p625_p1), %s450_s14, 128  }
 0x29c   : > { %866 = vsyncadd (%p625_p1), %s450_s14, 4294967168  ;;  %s22_s19 = sadd.s32 1, %s897_s19   ;;  %s1137_s17 = sld [smem:[#allocation15_spill]] }
 0x29d   : > { %p19_p2 = scmp.ge.s32.totalorder %s22_s19, 10   ;;  %s1138_s14 = sld [smem:[#allocation20_spill]] }
 0x29e   : > { %s1139_s15 = sld [smem:[#allocation16_spill]]  ;;  %s1143_s12 = smov %s873_s13 }
 0x29f   : > { %s1140_s16 = sld [smem:[#allocation17_spill]] }
 0x2a0   : > { %s1141_s28 = sld [smem:[#allocation18_spill]] }
 0x2a1   : > { %s1142_s18 = sld [smem:[#allocation19_spill]] }
 0x2a2   : > { %s1144_s13 = smov %s1137_s17  ;;  %21 = sbr.rel (!%p19_p2) target bundleno = 11 (0xb), region = 109 }
 0x2a6   : > { %s1145_s17 = smov %s1141_s28 }
 0x2a7   :  { %456 = vsyncpa [#allocation6], 1 }
 0x2a8   :  { %458 = vsyncpa [#allocation6 + $0x1], 1 }
 0x2a9   :  { %459 = vsyncpa [#allocation9], 1 }
 0x2aa   :  { %461 = vsyncpa [#allocation9 + $0x1], 1 }
 0x2ab   :  { %462 = vsyncpa [#allocation7], 1 }
 0x2ac   :  { %464 = vsyncpa [#allocation7 + $0x1], 1 }

</bundles_post_ra>
